<compile_context>
chip_gen: v5e
topology: v5e:2x2
jax: 0.10.0
libtpu: 0.0.40
codegen_flags: <defaults>
</compile_context>

<pallas_src>
import jax
import jax.numpy as jnp
import numpy as np
from jax.experimental import pallas as pl
from jax.experimental.pallas import tpu as pltpu


# ----------------------------------------------------------------------------
# Static interpolation matrix (torch.nn.Upsample semantics), built host-side
# with numpy so KT is a true compile-time constant.
# ----------------------------------------------------------------------------
def make_interp_matrix_np(in_size: int, out_size: int, align_corners: bool = True):
    if out_size == 1:
        src = np.zeros((1,), np.float32)
    elif align_corners:
        src = np.arange(out_size, dtype=np.float32) * (in_size - 1) / (out_size - 1)
    else:
        src = (np.arange(out_size, dtype=np.float32) + 0.5) * in_size / out_size - 0.5
        src = np.clip(src, 0.0, in_size - 1)
    i0 = np.clip(np.floor(src).astype(np.int64), 0, in_size - 1)
    i1 = np.minimum(i0 + 1, in_size - 1)
    w1 = (src - i0.astype(np.float32)).astype(np.float32)
    w0 = (1.0 - w1).astype(np.float32)
    m = np.zeros((out_size, in_size), np.float32)
    m[np.arange(out_size), i0] += w0
    m[np.arange(out_size), i1] += w1          # i0==i1 at edges -> weights sum to 1
    return m  # (out_size, in_size)


# ----------------------------------------------------------------------------
# Pallas kernel: per output-column chunk, 1x1 conv (bias folded) + interp.
# ----------------------------------------------------------------------------
def upsample_conv_kernel(xaug_ref, waug_ref, kt_ref, o_ref):
    # 1x1 conv over the whole batch, bias folded via augmented ones-row:
    #   (N*Cout, K_pad) @ (K_pad, H*W) -> (N*Cout, H*W), f32 accumulation.
    y = jnp.dot(waug_ref[...], xaug_ref[...], preferred_element_type=jnp.float32)

    # Bilinear upsample for this chunk of output pixels (Kronecker matmul):
    #   (N*Cout, H*W) @ (H*W, chunk) -> (N*Cout, chunk), lane-dense store.
    out = jnp.dot(y.astype(jnp.bfloat16), kt_ref[...],
                  preferred_element_type=jnp.float32)
    o_ref[...] = out.astype(o_ref.dtype)


def upsample_forward(x, w, b, scale_factor: int = 2, align_corners: bool = True,
                     grid_split: int = 2):
    """x: (N, Cin, H, W);  w: (Cout, Cin);  b: (Cout,)."""
    N, Cin, H, W = x.shape
    Cout = w.shape[0]
    Hout, Wout = H * scale_factor, W * scale_factor
    HW, HWout = H * W, Hout * Wout

    # ---- host-side interpolation constant -----------------------------------
    ah = make_interp_matrix_np(H, Hout, align_corners)   # (Hout, H)
    aw = make_interp_matrix_np(W, Wout, align_corners)   # (Wout, W)
    # KT[h*W + w, p*Wout + q] = ah[p, h] * aw[q, w]
    kt_np = np.einsum("ph,qw->hwpq", ah, aw).reshape(HW, HWout)

    # Pick a chunking of output columns that stays lane-dense (multiple of 128)
    # so stores are unmasked and the KT DMA pipelines against compute.
    g = max(1, grid_split)
    while g > 1 and (HWout % g != 0 or (HWout // g) % 128 != 0):
        g -= 1
    chunk = HWout // g

    # TODO(synk): for much larger feature maps the Kronecker KT (H*W x Hout*Wout,
    # double-buffered) no longer fits scoped VMEM (esp. v7x's 64 MiB physical);
    # switch to the separable two-matmul (A_h then A_w) path in that regime.
    assert HW * chunk * 2 <= (8 << 20), "KT chunk too large for Kronecker path"

    kt = jnp.asarray(kt_np, dtype=jnp.bfloat16)

    # ---- augmented conv operands (bias folded, K padded to sublane x8) ------
    K_aug = N * Cin + 1
    K_pad = ((K_aug + 7) // 8) * 8

    wblk = jnp.kron(jnp.eye(N, dtype=jnp.float32), w.astype(jnp.float32))   # (N*Cout, N*Cin)
    b_rows = jnp.tile(b.astype(jnp.float32), N)                             # (N*Cout,)
    waug = jnp.zeros((N * Cout, K_pad), jnp.float32)
    waug = waug.at[:, :N * Cin].set(wblk).at[:, N * Cin].set(b_rows)
    waug = waug.astype(jnp.bfloat16)

    xaug = jnp.zeros((K_pad, HW), jnp.float32)
    xaug = xaug.at[:N * Cin, :].set(x.reshape(N * Cin, HW).astype(jnp.float32))
    xaug = xaug.at[N * Cin, :].set(1.0)
    xaug = xaug.astype(jnp.bfloat16)

    out_flat = pl.pallas_call(
        upsample_conv_kernel,
        out_shape=jax.ShapeDtypeStruct((N * Cout, HWout), x.dtype),
        grid_spec=pltpu.PrefetchScalarGridSpec(
            num_scalar_prefetch=0,
            grid=(g,),
            in_specs=[
                pl.BlockSpec((K_pad, HW), lambda i: (0, 0)),        # x_aug (full)
                pl.BlockSpec((N * Cout, K_pad), lambda i: (0, 0)),  # W_aug (full)
                pl.BlockSpec((HW, chunk), lambda i: (0, i)),        # KT chunk
            ],
            out_specs=pl.BlockSpec((N * Cout, chunk), lambda i: (0, i)),
        ),
        compiler_params=pltpu.CompilerParams(
            dimension_semantics=("parallel",)),
    )(xaug, waug, kt)

    # Free contiguous reshape back to NCHW.
    return out_flat.reshape(N, Cout, Hout, Wout)


# ----------------------------------------------------------------------------
# Pure-JAX f32 reference (identical math) for correctness check
# ----------------------------------------------------------------------------
def reference(x, w, b, scale_factor=2, align_corners=True):
    N, Cin, H, W = x.shape
    Hout, Wout = H * scale_factor, W * scale_factor
    ah = jnp.asarray(make_interp_matrix_np(H, Hout, align_corners))
    aw = jnp.asarray(make_interp_matrix_np(W, Wout, align_corners))
    y = jnp.einsum("oc,nchw->nohw", w, x) + b.reshape(1, -1, 1, 1)
    t = jnp.einsum("nchw,qw->nchq", y, aw)
    return jnp.einsum("ph,nchq->ncpq", ah, t)


if __name__ == "__main__":
    key = jax.random.PRNGKey(0)
    kx, kw, kb = jax.random.split(key, 3)

    N, Cin, H, W = 2, 4, 16, 16
    Cout = Cin          # out_channels defaults to in_channels
    scale = 2

    x = jax.random.normal(kx, (N, Cin, H, W), dtype=jnp.float32)

    # Deterministic init mimicking torch Conv2d default (uniform +- 1/sqrt(fan_in))
    bound = 1.0 / np.sqrt(Cin * 1 * 1)
    w = jax.random.uniform(kw, (Cout, Cin), jnp.float32, -bound, bound)
    b = jax.random.uniform(kb, (Cout,), jnp.float32, -bound, bound)

    out = upsample_forward(x, w, b, scale_factor=scale, align_corners=True)
    out = jax.block_until_ready(out)

    ref = reference(x, w, b, scale_factor=scale, align_corners=True)
    assert out.shape == (N, Cout, H * scale, W * scale), out.shape
    # bf16 matmul operands -> relaxed tolerance (per perf review).
    np.testing.assert_allclose(np.asarray(out), np.asarray(ref), rtol=2e-2, atol=2e-2)

    print("KERNEL_OK")
</pallas_src>

<mosaic_0001>
module attributes {stable_mosaic.version = 11 : i64} {
  func.func @upsample_conv_kernel(%arg0: i32, %arg1: memref<16x256xbf16, #tpu.memory_space<vmem>>, %arg2: memref<8x16xbf16, #tpu.memory_space<vmem>>, %arg3: memref<256x512xbf16, #tpu.memory_space<vmem>>, %arg4: memref<8x512xf32, #tpu.memory_space<vmem>>) attributes {dimension_semantics = [#tpu.dimension_semantics<parallel>], iteration_bounds = array<i64: 2>, scalar_prefetch = 0 : i64, scratch_operands = 0 : i64, tpu.core_type = #tpu.core_type<tc>, window_params = [{pipeline_mode = #tpu.pipeline_mode<synchronous>, transform_indices = @transform_0, window_bounds = array<i64: 16, 256>}, {pipeline_mode = #tpu.pipeline_mode<synchronous>, transform_indices = @transform_1, window_bounds = array<i64: 8, 16>}, {transform_indices = @transform_2, window_bounds = array<i64: 256, 512>}, {transform_indices = @transform_3, window_bounds = array<i64: 8, 512>}]} {
    %c0 = arith.constant 0 : index
    %c0_0 = arith.constant 0 : index
    %0 = vector.load %arg2[%c0, %c0_0] : memref<8x16xbf16, #tpu.memory_space<vmem>>, vector<8x16xbf16>
    %c0_1 = arith.constant 0 : index
    %c0_2 = arith.constant 0 : index
    %1 = vector.load %arg1[%c0_1, %c0_2] : memref<16x256xbf16, #tpu.memory_space<vmem>>, vector<16x256xbf16>
    %cst = arith.constant dense<0.000000e+00> : vector<8x256xf32>
    %2 = tpu.matmul %0, %1, %cst {dimension_numbers = #tpu.dot_dimension_numbers<[1], [0], [0], [1], [0, 0, 1, 1], [], []>} : vector<8x16xbf16>, vector<16x256xbf16>, vector<8x256xf32> -> vector<8x256xf32>
    %3 = arith.truncf %2 : vector<8x256xf32> to vector<8x256xbf16>
    %c0_3 = arith.constant 0 : index
    %c0_4 = arith.constant 0 : index
    %4 = vector.load %arg3[%c0_3, %c0_4] : memref<256x512xbf16, #tpu.memory_space<vmem>>, vector<256x512xbf16>
    %cst_5 = arith.constant dense<0.000000e+00> : vector<8x512xf32>
    %5 = tpu.matmul %3, %4, %cst_5 {dimension_numbers = #tpu.dot_dimension_numbers<[1], [0], [0], [1], [0, 0, 1, 1], [], []>} : vector<8x256xbf16>, vector<256x512xbf16>, vector<8x512xf32> -> vector<8x512xf32>
    %c0_6 = arith.constant 0 : index
    %c0_7 = arith.constant 0 : index
    %6 = vector.load %arg4[%c0_6, %c0_7] : memref<8x512xf32, #tpu.memory_space<vmem>>, vector<8x512xf32>
    tpu.vector_store %arg4[%c0_6, %c0_7], %5 {strides = array<i32>} : memref<8x512xf32, #tpu.memory_space<vmem>>, vector<8x512xf32>,
    return
  }
  func.func @transform_0(%arg0: i32) -> (i32, i32) {
    %c0_i32 = arith.constant 0 : i32
    %c0_i32_0 = arith.constant 0 : i32
    %c0_i32_1 = arith.constant 0 : i32
    return %c0_i32, %c0_i32_0 : i32, i32
  }
  func.func @transform_1(%arg0: i32) -> (i32, i32) {
    %c0_i32 = arith.constant 0 : i32
    %c0_i32_0 = arith.constant 0 : i32
    %c0_i32_1 = arith.constant 0 : i32
    return %c0_i32, %c0_i32_0 : i32, i32
  }
  func.func @transform_2(%arg0: i32) -> (i32, i32) {
    %c0_i32 = arith.constant 0 : i32
    %c0_i32_0 = arith.constant 0 : i32
    return %c0_i32, %arg0 : i32, i32
  }
  func.func @transform_3(%arg0: i32) -> (i32, i32) {
    %c0_i32 = arith.constant 0 : i32
    %c0_i32_0 = arith.constant 0 : i32
    return %c0_i32, %arg0 : i32, i32
  }
}

</mosaic_0001>

<bundles_post_ra>
// kernel: tpu_custom_call.1
= control target key start
LH: loop header
LB: loop body
LE: loop exit
PB: predicated region body
PF: predicated region fallthrough
CT: control target
= control target key end

     0   :  { %8 = vsyncpa [#allocation3], 0  ;;  %s1766_s0 = inlined_call_operand.hbm [shape: bf16[16,256], index: 0, kind: input, shape index: {}]   ;;  %s1767_s1 = inlined_call_operand.hbm [shape: bf16[8,16], index: 1, kind: input, shape index: {}]   ;;  %s1768_s2 = inlined_call_operand.hbm [shape: bf16[256,1024], index: 2, kind: input, shape index: {}]   ;;  %s1769_s3 = inlined_call_operand.hbm [shape: f32[8,1024], index: 3, kind: output, shape index: {}]  }
   0x1   :  { %9 = vsyncpa [#allocation6], 0 }
   0x2   :  { %10 = vsyncpa [#allocation4], 0 }
   0x3   :  { %12 = vsyncpa [#allocation4 + $0x1], 0  ;;  %s1483_s12 = smov 0   ;;  %s1485_s13 = smov 0  }
   0x4   :  { %s1487_s14 = smov 0   ;;  %s1489_s15 = smov 0  }
   0x5 LB: > { %s1504_s16 = sadd.s32 4294967295, %s1454_s15   ;;  %s866_s17 = sadd.s32 4294967294, %s1454_s15   ;;  %s1454_s15 = sphi %s1489_s15, %s1780_s15   ;;  %s1450_s14 = sphi %s1487_s14, %s1779_s14   ;;  %s1446_s13 = sphi %s1485_s13, %s1778_s13   ;;  %s1442_s12 = sphi %s1483_s12, %s1777_s12  }
   0x6   : > { %s1508_s18 = sadd.s32 1, %s1454_s15   ;;  %s67_s19 = sadd.s32 1, %s1450_s14 }
   0x7   : > { %s64_s20 = ssub.s32 %s1454_s15, %s1508_s18  ;;  %p74_p0 = scmp.ne.s32.totalorder %s1450_s14, %s1446_s13 }
   0x8   : > { %p65_p1 = scmp.eq.s32.totalorder %s64_s20, 0  ;;  %p75_p2 = scmp.eq.s32.totalorder %s1454_s15, 0 }
   0x9   : > { %p80_p3 = scmp.ne.s32.totalorder %s1446_s13, %s1442_s12  ;;  %p81_p4 = scmp.eq.s32.totalorder %s1504_s16, 0 }
   0xa   : > { %s1520_s21 = scalar_select %p65_p1, %s1450_s14, %s67_s19  }
   0xb   : > { %p1522_p5 = por %p75_p2, %p74_p0  ;;  %p1528_p6 = por %p81_p4, %p80_p3 }
   0xc   : > { %p104_p7 = scmp.eq.s32.totalorder %s1504_s16, 1  ;;  %p110_p8 = scmp.eq.s32.totalorder %s866_s17, 1 }
   0xd   : > { %p867_p9 = scmp.ge.s32.totalorder %s1454_s15, 1  ;;  %p117_p10 = scmp.lt.s32.totalorder %s1454_s15, 3 }
   0xe   : > { %p1535_p11 = por %p104_p7, %p74_p0  ;;  %p1539_p12 = por %p110_p8, %p80_p3 }
   0xf   : > { %p1543_p13 = pnand %p867_p9, %p117_p10  ;;  %s128_s29 = sshll.u32 %s1766_s0, 4  ;;  %s129_s29 = int_to_ptr.hbm [resolvable:$true] %s128_s29 }
  0x10   : > { %s1456_s30 = smov [#allocation2]   ;;  %p1247_p3 = scmp.lt.s32.totalorder %s1454_s15, 2 }
  0x11   : > { %p1230_p1 = pneg %p1543_p13  ;;  %s130_s4 = sshll.u32 %s1456_s30, 4  ;;  %s131_s4 = int_to_ptr.vmem [resolvable:$true] %s130_s4 }
  0x12   : > { %s1457_s5 = smov 128   ;;  %s1458_s6 = smov 8  }
  0x13   : > { %p1231_p0 = pnand %p1230_p1, %p81_p4  ;;  %p1558_p7 = pnand %p1247_p3, %p1522_p5 }
  0x14   : > { %s143_s10 = sshll.u32 %s1767_s1, 4  ;;  %s1459_s11 = smov [#allocation5]   ;;  %s144_s10 = int_to_ptr.hbm [resolvable:$true] %s143_s10 }
  0x15   : > { %1233 = dma.hbm_to_vmem [thread:$0]  (!%p1231_p0), %s129_s29, 256, %s131_s4, [#allocation3], %s1457_s5, %s1457_s5, %s1458_s6  }
  0x16   : > { %s145_s17 = sshll.u32 %s1459_s11, 4  ;;  %s156_s19 = sand.u32 1, %s1454_s15   ;;  %s146_s17 = int_to_ptr.vmem [resolvable:$true] %s145_s17 }
  0x17   : > { %1236 = dma.hbm_to_vmem [thread:$0]  (!%p1231_p0), %s144_s10, 64, %s146_s17, [#allocation6]  }
  0x18   : > { %s158_s20 = sand.u32 1, %s1450_s14   ;;  %s1150_s28 = sshll.u32 %s1454_s15, 4 }
  0x19   : > { %s871_s27 = sshll.u32 %s158_s20, 9  ;;  %s165_s30 = scalar_lea.hbm %s1768_s2, %s1150_s28 }
  0x1a   : > { %s166_s4 = sshll.u32 %s165_s30, 4  ;;  %s160_s5 = scalar_lea.vmem [#allocation7], %s871_s27  ;;  %s167_s4 = int_to_ptr.hbm [resolvable:$true] %s166_s4 }
  0x1b   : > { %s168_s6 = sshll.u32 %s160_s5, 4  ;;  %s157_s8 = scalar_lea.sflag [#allocation3], %s156_s19  ;;  %s169_s6 = int_to_ptr.vmem [resolvable:$true] %s168_s6 }
  0x1c   : > { %s1350_s9 = sshra.s32 %s167_s4, 4  ;;  %p1354_p8 = pneg %p1558_p7  ;;  %s1351_s9 = int_to_ptr.hbm [resolvable:$true] %s1350_s9 }
  0x1d   : > { %s1352_s11 = scalar_lea.hbm %s1351_s9, 512  ;;  %s1357_s20 = scalar_lea.hbm %s1768_s2, 1024 }
  0x1e   : > { %p1353_p5 = scmp.ne.s32.totalorder %s1351_s9, %s1352_s11  ;;  %p1358_p1 = scmp.lt.s32.totalorder %s1351_s9, %s1768_s2 }
  0x1f   : > { %p1359_p0 = scmp.lt.s32.totalorder %s1357_s20, %s1352_s11 }
  0x20   : > { %p1355_p9 = pnand %p1354_p8, %p1353_p5 }
  0x21   : > { %p1360_p3 = por %p1359_p0, %p1358_p1 }
  0x22   : > { %p1356_p10 = pneg %p1355_p9 }
  0x24   : > { %p1361_p2 = pnand %p1360_p3, %p1356_p10 }
  0x26   : > { %1364 = shalt.err (!%p1361_p2)
}
  0x27   : > { %s1460_s19 = smov 512   ;;  %s1461_s27 = smov 256  }
  0x28   : > { %s1462_s22 = smov 16   ;;  %180 = sbr.rel (%p1543_p13) target bundleno = 343 (0x157), region = 32 }
  0x29   : > { %1240 = dma.hbm_to_vmem [thread:$0]  (!%p1558_p7), %s167_s4, 8192, %s169_s6, %s157_s8, %s1460_s19, %s1461_s27, %s1462_s22  }
  0x2d   : > { %1425 = dma.done.wait (%p81_p4), [#allocation3], 256  }
  0x2e   : > { %1427 = vsyncadd (%p81_p4), [#allocation3], 4294967040 }
  0x2f   : > { %1429 = dma.done.wait (%p81_p4), [#allocation6], 64  }
  0x30   : > { %1431 = vsyncadd (%p81_p4), [#allocation6], 4294967232  ;;  %s192_s7 = sand.u32 1, %s1504_s16   ;;  %s1593_s30 = sand.u32 1, %s1446_s13  }
  0x31   : > { %s877_s26 = sshll.u32 %s1593_s30, 9  ;;  %s193_s4 = scalar_lea.sflag [#allocation3], %s192_s7 }
  0x32   : > { %s1596_s5 = scalar_lea.vmem [#allocation7], %s877_s26 }
  0x33   : > { %1433 = dma.done.wait (%p1528_p6), %s193_s4, 8192  }
  0x34   : > { %1435 = vsyncadd (%p1528_p6), %s193_s4, 4294959104  ;;  %vm236_vm0 = vcmask 130048   ;;  %v881_v0 = vld [vmem:[#allocation2] sm:$0xf]  ;;  %v1152_v1 = vld [vmem:[#allocation2 + $0x4] sm:$0xf0] }
  0x35   : > { %v1151_v2 = vld [vmem:[#allocation2 + $0x4] sm:$0xf]  ;;  %v882_v3 = vor.u32 %v1152_v1, %v881_v0  ;;  %v883_v4 = vld [vmem:[#allocation2 + $0x8] sm:$0xf0]  ;;  %v223_v5 = vld [vmem:[#allocation5] sm:$0xf] }
  0x36   : > { %v1003_v6 = vld [vmem:[%s1596_s5 + $0xe0] sm:$0xf]  ;;  %v886_v7 = vor.u32 %v1151_v2, %v883_v4  ;;  %v1183_v8 = vld [vmem:[%s1596_s5 + $0xec] sm:$0xf0]  ;;  %v1181_v13 = vld [vmem:[%s1596_s5 + $0xe4] sm:$0xf] }
  0x37   : > { %v1131_v9 = vld [vmem:[%s1596_s5 + $0x1e0] sm:$0xf]  ;;  %v1215_v10 = vld [vmem:[%s1596_s5 + $0x1ec] sm:$0xf0]  ;;  %247 = vmatpush.bf16.msra.mxu0 %v882_v3  ;;  %v1004_v11 = vor.u32 %v1183_v8, %v1003_v6  ;;  %v1005_v14 = vld [vmem:[%s1596_s5 + $0xf0] sm:$0xf0] }
  0x38   : > { %v1132_v12 = vor.u32 %v1215_v10, %v1131_v9  ;;  %v1213_v15 = vld [vmem:[%s1596_s5 + $0x1e4] sm:$0xf]  ;;  %260 = vmatpush.bf16.msra.mxu1 %v886_v7  ;;  %v1008_v16 = vor.u32 %v1181_v13, %v1005_v14  ;;  %v1133_v17 = vld [vmem:[%s1596_s5 + $0x1f0] sm:$0xf0]  ;;  %v987_v18 = vld [vmem:[%s1596_s5 + $0xc0] sm:$0xf] }
  0x39   : > { %v1179_v19 = vld [vmem:[%s1596_s5 + $0xcc] sm:$0xf0]  ;;  %652 = vmatpush.bf16.msra.mxu2 %v1004_v11  ;;  %v1136_v20 = vor.u32 %v1213_v15, %v1133_v17  ;;  %v1115_v22 = vld [vmem:[%s1596_s5 + $0x1c0] sm:$0xf]  ;;  %v1177_v24 = vld [vmem:[%s1596_s5 + $0xc4] sm:$0xf] }
  0x3a   : > { %665 = vmatpush.bf16.msra.mxu3 %v1132_v12  ;;  %v988_v21 = vor.u32 %v1179_v19, %v987_v18  ;;  %v1211_v23 = vld [vmem:[%s1596_s5 + $0x1cc] sm:$0xf0]  ;;  %887 = vmatmul.msk.bf16.vlgmr.msra.gmra.mxu0 %vm236_vm0, %v223_v5  ;;  %v989_v26 = vld [vmem:[%s1596_s5 + $0xd0] sm:$0xf0]  ;;  %v1209_v27 = vld [vmem:[%s1596_s5 + $0x1c4] sm:$0xf] }
  0x3b   : > { %v1116_v25 = vor.u32 %v1211_v23, %v1115_v22  ;;  %v1117_v28 = vld [vmem:[%s1596_s5 + $0x1d0] sm:$0xf0]  ;;  %888 = vmatmul.msk.bf16.vlgmr.msra.gmra.mxu1 %vm236_vm0, %v223_v5  ;;  %678 = vmatpush.bf16.msrb.mxu0 %v1008_v16  ;;  %v992_v29 = vor.u32 %v1177_v24, %v989_v26  ;;  %v971_v30 = vld [vmem:[%s1596_s5 + $0xa0] sm:$0xf]  ;;  %v1175_v31 = vld [vmem:[%s1596_s5 + $0xac] sm:$0xf0] }
  0x3c   : > { %v1099_v32 = vld [vmem:[%s1596_s5 + $0x1a0] sm:$0xf]  ;;  %691 = vmatpush.bf16.msrb.mxu1 %v1136_v20  ;;  %v1120_v33 = vor.u32 %v1209_v27, %v1117_v28  ;;  %v1207_v34 = vld [vmem:[%s1596_s5 + $0x1ac] sm:$0xf0]  ;;  %v1173_v35 = vld [vmem:[%s1596_s5 + $0xa4] sm:$0xf]  ;;  %v972_v37 = vor.u32 %v1175_v31, %v971_v30 }
  0x3d   : > { %v973_v36 = vld [vmem:[%s1596_s5 + $0xb0] sm:$0xf0]  ;;  %653 = vmatpush.bf16.msra.mxu2 %v988_v21  ;;  %v1100_v38 = vor.u32 %v1207_v34, %v1099_v32  ;;  %v1205_v39 = vld [vmem:[%s1596_s5 + $0x1a4] sm:$0xf]  ;;  %v955_v41 = vld [vmem:[%s1596_s5 + $0x80] sm:$0xf] }
  0x3e   : > { %666 = vmatpush.bf16.msra.mxu3 %v1116_v25  ;;  %v1101_v40 = vld [vmem:[%s1596_s5 + $0x1b0] sm:$0xf0]  ;;  %v1171_v42 = vld [vmem:[%s1596_s5 + $0x8c] sm:$0xf0]  ;;  %v1083_v43 = vld [vmem:[%s1596_s5 + $0x180] sm:$0xf]  ;;  %v976_v45 = vor.u32 %v1173_v35, %v973_v36 }
  0x3f   : > { %v1203_v44 = vld [vmem:[%s1596_s5 + $0x18c] sm:$0xf0]  ;;  %679 = vmatpush.bf16.msrb.mxu0 %v992_v29  ;;  %v1104_v46 = vor.u32 %v1205_v39, %v1101_v40  ;;  %v1169_v47 = vld [vmem:[%s1596_s5 + $0x84] sm:$0xf]  ;;  %v957_v48 = vld [vmem:[%s1596_s5 + $0x90] sm:$0xf0]  ;;  %v956_v49 = vor.u32 %v1171_v42, %v955_v41 }
  0x40   : > { %692 = vmatpush.bf16.msrb.mxu1 %v1120_v33  ;;  %v1084_v50 = vor.u32 %v1203_v44, %v1083_v43  ;;  %v1201_v51 = vld [vmem:[%s1596_s5 + $0x184] sm:$0xf]  ;;  %v1085_v52 = vld [vmem:[%s1596_s5 + $0x190] sm:$0xf0]  ;;  %v939_v53 = vld [vmem:[%s1596_s5 + $0x60] sm:$0xf]  ;;  %v960_v57 = vor.u32 %v1169_v47, %v957_v48 }
  0x41   : > { %654 = vmatpush.bf16.msra.mxu2 %v972_v37  ;;  %v1167_v54 = vld [vmem:[%s1596_s5 + $0x6c] sm:$0xf0]  ;;  %v1067_v55 = vld [vmem:[%s1596_s5 + $0x160] sm:$0xf]  ;;  %v1088_v58 = vor.u32 %v1201_v51, %v1085_v52  ;;  %v1165_v59 = vld [vmem:[%s1596_s5 + $0x64] sm:$0xf] }
  0x42   : > { %667 = vmatpush.bf16.msra.mxu3 %v1100_v38  ;;  %v1199_v56 = vld [vmem:[%s1596_s5 + $0x16c] sm:$0xf0]  ;;  %v941_v60 = vld [vmem:[%s1596_s5 + $0x70] sm:$0xf0]  ;;  %v940_v61 = vor.u32 %v1167_v54, %v939_v53  ;;  %v1197_v63 = vld [vmem:[%s1596_s5 + $0x164] sm:$0xf] }
  0x43   : > { %680 = vmatpush.bf16.msrb.mxu0 %v976_v45  ;;  %v1068_v62 = vor.u32 %v1199_v56, %v1067_v55  ;;  %v1069_v0 = vld [vmem:[%s1596_s5 + $0x170] sm:$0xf0]  ;;  %v923_v1 = vld [vmem:[%s1596_s5 + $0x40] sm:$0xf]  ;;  %v1163_v2 = vld [vmem:[%s1596_s5 + $0x4c] sm:$0xf0]  ;;  %v944_v5 = vor.u32 %v1165_v59, %v941_v60 }
  0x44   : > { %693 = vmatpush.bf16.msrb.mxu1 %v1104_v46  ;;  %v1051_v3 = vld [vmem:[%s1596_s5 + $0x140] sm:$0xf]  ;;  %v1195_v4 = vld [vmem:[%s1596_s5 + $0x14c] sm:$0xf0]  ;;  %v1072_v6 = vor.u32 %v1197_v63, %v1069_v0  ;;  %v1161_v7 = vld [vmem:[%s1596_s5 + $0x44] sm:$0xf]  ;;  %v924_v9 = vor.u32 %v1163_v2, %v923_v1 }
  0x45   : > { %655 = vmatpush.bf16.msra.mxu2 %v956_v49  ;;  %v925_v8 = vld [vmem:[%s1596_s5 + $0x50] sm:$0xf0]  ;;  %v1052_v10 = vor.u32 %v1195_v4, %v1051_v3  ;;  %v1193_v11 = vld [vmem:[%s1596_s5 + $0x144] sm:$0xf]  ;;  %v907_v13 = vld [vmem:[%s1596_s5 + $0x20] sm:$0xf] }
  0x46   : > { %668 = vmatpush.bf16.msra.mxu3 %v1084_v50  ;;  %v1053_v12 = vld [vmem:[%s1596_s5 + $0x150] sm:$0xf0]  ;;  %v1159_v14 = vld [vmem:[%s1596_s5 + $0x2c] sm:$0xf0]  ;;  %v1035_v15 = vld [vmem:[%s1596_s5 + $0x120] sm:$0xf]  ;;  %v928_v17 = vor.u32 %v1161_v7, %v925_v8 }
  0x47   : > { %681 = vmatpush.bf16.msrb.mxu0 %v960_v57  ;;  %v1191_v16 = vld [vmem:[%s1596_s5 + $0x12c] sm:$0xf0]  ;;  %v1056_v18 = vor.u32 %v1193_v11, %v1053_v12  ;;  %v1157_v19 = vld [vmem:[%s1596_s5 + $0x24] sm:$0xf]  ;;  %v909_v20 = vld [vmem:[%s1596_s5 + $0x30] sm:$0xf0]  ;;  %v908_v22 = vor.u32 %v1159_v14, %v907_v13 }
  0x48   : > { %694 = vmatpush.bf16.msrb.mxu1 %v1088_v58  ;;  %v1189_v21 = vld [vmem:[%s1596_s5 + $0x124] sm:$0xf]  ;;  %v1036_v23 = vor.u32 %v1191_v16, %v1035_v15  ;;  %v1037_v24 = vld [vmem:[%s1596_s5 + $0x130] sm:$0xf0]  ;;  %v891_v25 = vld [vmem:[%s1596_s5] sm:$0xf]  ;;  %v912_v30 = vor.u32 %v1157_v19, %v909_v20 }
  0x49   : > { %656 = vmatpush.bf16.msra.mxu2 %v940_v61  ;;  %v1155_v26 = vld [vmem:[%s1596_s5 + $0xc] sm:$0xf0]  ;;  %v1019_v27 = vld [vmem:[%s1596_s5 + $0x100] sm:$0xf]  ;;  %v1011_v29 = vld [vmem:[%s1596_s5 + $0xe8] sm:$0xf]  ;;  %v1040_v34 = vor.u32 %v1189_v21, %v1037_v24 }
  0x4a   : > { %669 = vmatpush.bf16.msra.mxu3 %v1068_v62  ;;  %v1187_v28 = vld [vmem:[%s1596_s5 + $0x10c] sm:$0xf0]  ;;  %v1184_v31 = vld [vmem:[%s1596_s5 + $0xf4] sm:$0xf0]  ;;  %v1139_v32 = vld [vmem:[%s1596_s5 + $0x1e8] sm:$0xf]  ;;  %v892_v38 = vor.u32 %v1155_v26, %v891_v25 }
  0x4b   : > { %682 = vmatpush.bf16.msrb.mxu0 %v944_v5  ;;  %v1216_v33 = vld [vmem:[%s1596_s5 + $0x1f4] sm:$0xf0]  ;;  %v1153_v35 = vld [vmem:[%s1596_s5 + $0x4] sm:$0xf]  ;;  %v893_v36 = vld [vmem:[%s1596_s5 + $0x10] sm:$0xf0]  ;;  %v1020_v39 = vor.u32 %v1187_v28, %v1019_v27  ;;  %v1012_v43 = vor.u32 %v1184_v31, %v1011_v29 }
  0x4c   : > { %695 = vmatpush.bf16.msrb.mxu1 %v1072_v6  ;;  %v1185_v37 = vld [vmem:[%s1596_s5 + $0x104] sm:$0xf]  ;;  %v1021_v40 = vld [vmem:[%s1596_s5 + $0x110] sm:$0xf0]  ;;  %v1182_v41 = vld [vmem:[%s1596_s5 + $0xec] sm:$0xf]  ;;  %v1140_v44 = vor.u32 %v1216_v33, %v1139_v32  ;;  %v896_v48 = vor.u32 %v1153_v35, %v893_v36 }
  0x4d   : > { %657 = vmatpush.bf16.msra.mxu2 %v924_v9  ;;  %v1013_v42 = vld [vmem:[%s1596_s5 + $0xf8] sm:$0xf0]  ;;  %v1214_v45 = vld [vmem:[%s1596_s5 + $0x1ec] sm:$0xf]  ;;  %v995_v47 = vld [vmem:[%s1596_s5 + $0xc8] sm:$0xf]  ;;  %v1024_v52 = vor.u32 %v1185_v37, %v1021_v40 }
  0x4e   : > { %670 = vmatpush.bf16.msra.mxu3 %v1052_v10  ;;  %v1141_v46 = vld [vmem:[%s1596_s5 + $0x1f8] sm:$0xf0]  ;;  %v1180_v49 = vld [vmem:[%s1596_s5 + $0xd4] sm:$0xf0]  ;;  %v1123_v50 = vld [vmem:[%s1596_s5 + $0x1c8] sm:$0xf]  ;;  %v1016_v53 = vor.u32 %v1182_v41, %v1013_v42 }
  0x4f   : > { %683 = vmatpush.bf16.msrb.mxu0 %v928_v17  ;;  %v1212_v51 = vld [vmem:[%s1596_s5 + $0x1d4] sm:$0xf0]  ;;  %v1144_v54 = vor.u32 %v1214_v45, %v1141_v46  ;;  %v1178_v55 = vld [vmem:[%s1596_s5 + $0xcc] sm:$0xf]  ;;  %v997_v56 = vld [vmem:[%s1596_s5 + $0xd8] sm:$0xf0]  ;;  %v996_v57 = vor.u32 %v1180_v49, %v995_v47 }
  0x50   : > { %696 = vmatpush.bf16.msrb.mxu1 %v1056_v18  ;;  %v1124_v58 = vor.u32 %v1212_v51, %v1123_v50  ;;  %v1210_v59 = vld [vmem:[%s1596_s5 + $0x1cc] sm:$0xf]  ;;  %v1125_v60 = vld [vmem:[%s1596_s5 + $0x1d8] sm:$0xf0]  ;;  %v979_v61 = vld [vmem:[%s1596_s5 + $0xa8] sm:$0xf]  ;;  %v1000_v1 = vor.u32 %v1178_v55, %v997_v56 }
  0x51   : > { %658 = vmatpush.bf16.msra.mxu2 %v908_v22  ;;  %v1176_v62 = vld [vmem:[%s1596_s5 + $0xb4] sm:$0xf0]  ;;  %v1107_v63 = vld [vmem:[%s1596_s5 + $0x1a8] sm:$0xf]  ;;  %v1128_v2 = vor.u32 %v1210_v59, %v1125_v60  ;;  %v1174_v3 = vld [vmem:[%s1596_s5 + $0xac] sm:$0xf] }
  0x52   : > { %671 = vmatpush.bf16.msra.mxu3 %v1036_v23  ;;  %v1208_v0 = vld [vmem:[%s1596_s5 + $0x1b4] sm:$0xf0]  ;;  %v981_v4 = vld [vmem:[%s1596_s5 + $0xb8] sm:$0xf0]  ;;  %v980_v5 = vor.u32 %v1176_v62, %v979_v61  ;;  %v1206_v7 = vld [vmem:[%s1596_s5 + $0x1ac] sm:$0xf] }
  0x53   : > { %684 = vmatpush.bf16.msrb.mxu0 %v912_v30  ;;  %v1108_v6 = vor.u32 %v1208_v0, %v1107_v63  ;;  %v1109_v8 = vld [vmem:[%s1596_s5 + $0x1b8] sm:$0xf0]  ;;  %v984_v9 = vor.u32 %v1174_v3, %v981_v4  ;;  %v963_v11 = vld [vmem:[%s1596_s5 + $0x88] sm:$0xf]  ;;  %v1172_v12 = vld [vmem:[%s1596_s5 + $0x94] sm:$0xf0] }
  0x54   : > { %697 = vmatpush.bf16.msrb.mxu1 %v1040_v34  ;;  %v1112_v10 = vor.u32 %v1206_v7, %v1109_v8  ;;  %v1091_v13 = vld [vmem:[%s1596_s5 + $0x188] sm:$0xf]  ;;  %v964_v14 = vor.u32 %v1172_v12, %v963_v11  ;;  %v1204_v15 = vld [vmem:[%s1596_s5 + $0x194] sm:$0xf0]  ;;  %v1170_v16 = vld [vmem:[%s1596_s5 + $0x8c] sm:$0xf] }
  0x55   : > { %659 = vmatpush.bf16.msra.mxu2 %v892_v38  ;;  %v965_v17 = vld [vmem:[%s1596_s5 + $0x98] sm:$0xf0]  ;;  %v1092_v18 = vor.u32 %v1204_v15, %v1091_v13  ;;  %v1202_v20 = vld [vmem:[%s1596_s5 + $0x18c] sm:$0xf]  ;;  %v947_v23 = vld [vmem:[%s1596_s5 + $0x68] sm:$0xf] }
  0x56   : > { %672 = vmatpush.bf16.msra.mxu3 %v1020_v39  ;;  %v968_v19 = vor.u32 %v1170_v16, %v965_v17  ;;  %v1093_v21 = vld [vmem:[%s1596_s5 + $0x198] sm:$0xf0]  ;;  %v1168_v24 = vld [vmem:[%s1596_s5 + $0x74] sm:$0xf0]  ;;  %v1075_v25 = vld [vmem:[%s1596_s5 + $0x168] sm:$0xf] }
  0x57   : > { %685 = vmatpush.bf16.msrb.mxu0 %v896_v48  ;;  %v1096_v22 = vor.u32 %v1202_v20, %v1093_v21  ;;  %v948_v26 = vor.u32 %v1168_v24, %v947_v23  ;;  %v1200_v27 = vld [vmem:[%s1596_s5 + $0x174] sm:$0xf0]  ;;  %v1166_v28 = vld [vmem:[%s1596_s5 + $0x6c] sm:$0xf]  ;;  %v949_v29 = vld [vmem:[%s1596_s5 + $0x78] sm:$0xf0] }
  0x58   : > { %698 = vmatpush.bf16.msrb.mxu1 %v1024_v52  ;;  %v1076_v30 = vor.u32 %v1200_v27, %v1075_v25  ;;  %v952_v31 = vor.u32 %v1166_v28, %v949_v29  ;;  %v1198_v32 = vld [vmem:[%s1596_s5 + $0x16c] sm:$0xf]  ;;  %v1077_v33 = vld [vmem:[%s1596_s5 + $0x178] sm:$0xf0]  ;;  %v931_v35 = vld [vmem:[%s1596_s5 + $0x48] sm:$0xf] }
  0x59   : > { %704 = vmatpush.bf16.msrb.mxu2 %v1012_v43  ;;  %v1080_v34 = vor.u32 %v1198_v32, %v1077_v33  ;;  %v1164_v36 = vld [vmem:[%s1596_s5 + $0x54] sm:$0xf0]  ;;  %v1059_v37 = vld [vmem:[%s1596_s5 + $0x148] sm:$0xf]  ;;  %v1162_v40 = vld [vmem:[%s1596_s5 + $0x4c] sm:$0xf] }
  0x5a   : > { %717 = vmatpush.bf16.msrb.mxu3 %v1140_v44  ;;  %v932_v38 = vor.u32 %v1164_v36, %v931_v35  ;;  %v1196_v39 = vld [vmem:[%s1596_s5 + $0x154] sm:$0xf0]  ;;  %v933_v41 = vld [vmem:[%s1596_s5 + $0x58] sm:$0xf0]  ;;  %v1194_v44 = vld [vmem:[%s1596_s5 + $0x14c] sm:$0xf] }
  0x5b   : > { %730 = vmatpush.bf16.msra.mxu0 %v1016_v53  ;;  %v1060_v42 = vor.u32 %v1196_v39, %v1059_v37  ;;  %v936_v43 = vor.u32 %v1162_v40, %v933_v41  ;;  %v1061_v45 = vld [vmem:[%s1596_s5 + $0x158] sm:$0xf0]  ;;  %v915_v47 = vld [vmem:[%s1596_s5 + $0x28] sm:$0xf]  ;;  %v1160_v48 = vld [vmem:[%s1596_s5 + $0x34] sm:$0xf0] }
  0x5c   : > { %743 = vmatpush.bf16.msra.mxu1 %v1144_v54  ;;  %v1064_v46 = vor.u32 %v1194_v44, %v1061_v45  ;;  %v1043_v49 = vld [vmem:[%s1596_s5 + $0x128] sm:$0xf]  ;;  %v916_v50 = vor.u32 %v1160_v48, %v915_v47  ;;  %v1192_v51 = vld [vmem:[%s1596_s5 + $0x134] sm:$0xf0]  ;;  %v1158_v52 = vld [vmem:[%s1596_s5 + $0x2c] sm:$0xf] }
  0x5d   : > { %705 = vmatpush.bf16.msrb.mxu2 %v996_v57  ;;  %v917_v53 = vld [vmem:[%s1596_s5 + $0x38] sm:$0xf0]  ;;  %v1044_v54 = vor.u32 %v1192_v51, %v1043_v49  ;;  %v1190_v56 = vld [vmem:[%s1596_s5 + $0x12c] sm:$0xf]  ;;  %v1156_v60 = vld [vmem:[%s1596_s5 + $0x14] sm:$0xf0] }
  0x5e   : > { %718 = vmatpush.bf16.msrb.mxu3 %v1124_v58  ;;  %v920_v55 = vor.u32 %v1158_v52, %v917_v53  ;;  %v1045_v57 = vld [vmem:[%s1596_s5 + $0x138] sm:$0xf0]  ;;  %v899_v58 = vld [vmem:[%s1596_s5 + $0x8] sm:$0xf]  ;;  %v1188_v62 = vld [vmem:[%s1596_s5 + $0x114] sm:$0xf0] }
  0x5f   : > { %731 = vmatpush.bf16.msra.mxu0 %v1000_v1  ;;  %v1048_v59 = vor.u32 %v1190_v56, %v1045_v57  ;;  %v1027_v61 = vld [vmem:[%s1596_s5 + $0x108] sm:$0xf]  ;;  %v900_v63 = vor.u32 %v1156_v60, %v899_v58  ;;  %v1154_v0 = vld [vmem:[%s1596_s5 + $0xc] sm:$0xf]  ;;  %v901_v1 = vld [vmem:[%s1596_s5 + $0x18] sm:$0xf0] }
  0x60   : > { %744 = vmatpush.bf16.msra.mxu1 %v1128_v2  ;;  %v1186_v2 = vld [vmem:[%s1596_s5 + $0x10c] sm:$0xf]  ;;  %v1028_v3 = vor.u32 %v1188_v62, %v1027_v61  ;;  %v904_v4 = vor.u32 %v1154_v0, %v901_v1  ;;  %s878_s23 = sshll.u32 %s1593_s30, 5  ;;  %s1217_s8 = sshll.u32 %s1504_s16, 5 }
  0x61   : > { %706 = vmatpush.bf16.msrb.mxu2 %v980_v5  ;;  %v1029_v5 = vld [vmem:[%s1596_s5 + $0x118] sm:$0xf0]  ;;  %s219_s6 = scalar_lea.vmem [#allocation8], %s878_s23  ;;  %s772_s10 = scalar_lea.hbm %s1769_s3, %s1217_s8 }
  0x62   : > { %719 = vmatpush.bf16.msrb.mxu3 %v1108_v6  ;;  %v1032_v6 = vor.u32 %v1186_v2, %v1029_v5  ;;  %s774_s17 = sshll.u32 %s219_s6, 4  ;;  %s776_s20 = sshll.u32 %s772_s10, 4  ;;  %s775_s17 = int_to_ptr.vmem [resolvable:$true] %s774_s17  ;;  %s777_s20 = int_to_ptr.hbm [resolvable:$true] %s776_s20 }
  0x63   : > { %732 = vmatpush.bf16.msra.mxu0 %v984_v9  ;;  %s761_s16 = scalar_lea.sflag [#allocation4], %s1593_s30  ;;  %s1394_s29 = sshra.s32 %s777_s20, 4  ;;  %s1395_s29 = int_to_ptr.hbm [resolvable:$true] %s1394_s29 }
  0x64   : > { %745 = vmatpush.bf16.msra.mxu1 %v1112_v10  ;;  %s1396_s28 = scalar_lea.hbm %s1395_s29, 32  ;;  %s1400_s22 = scalar_lea.hbm %s1769_s3, 64 }
  0x65   : > { %707 = vmatpush.bf16.msrb.mxu2 %v964_v14  ;;  %p1397_p4 = scmp.ne.s32.totalorder %s1395_s29, %s1396_s28  ;;  %p1401_p2 = scmp.lt.s32.totalorder %s1395_s29, %s1769_s3 }
  0x66   : > { %720 = vmatpush.bf16.msrb.mxu3 %v1092_v18  ;;  %p1402_p7 = scmp.lt.s32.totalorder %s1400_s22, %s1396_s28 }
  0x67   : > { %733 = vmatpush.bf16.msra.mxu0 %v968_v19  ;;  %p1398_p6 = pnand %p1397_p4, %p1535_p11 }
  0x68   : > { %746 = vmatpush.bf16.msra.mxu1 %v1096_v22  ;;  %p1403_p5 = por %p1402_p7, %p1401_p2 }
  0x69   : > { %708 = vmatpush.bf16.msrb.mxu2 %v948_v26  ;;  %p1399_p13 = pneg %p1398_p6 }
  0x6a   : > { %721 = vmatpush.bf16.msrb.mxu3 %v1076_v30 }
  0x6b   : > { %734 = vmatpush.bf16.msra.mxu0 %v952_v31  ;;  %p1404_p8 = pnand %p1403_p5, %p1399_p13 }
  0x6c   : > { %747 = vmatpush.bf16.msra.mxu1 %v1080_v34 }
  0x6d   : > { %709 = vmatpush.bf16.msrb.mxu2 %v932_v38 }
  0x6e   : > { %722 = vmatpush.bf16.msrb.mxu3 %v1060_v42 }
  0x6f   : > { %735 = vmatpush.bf16.msra.mxu0 %v936_v43 }
  0x70   : > { %748 = vmatpush.bf16.msra.mxu1 %v1064_v46 }
  0x71   : > { %710 = vmatpush.bf16.msrb.mxu2 %v916_v50 }
  0x72   : > { %723 = vmatpush.bf16.msrb.mxu3 %v1044_v54 }
  0x73   : > { %736 = vmatpush.bf16.msra.mxu0 %v920_v55 }
  0x74   : > { %749 = vmatpush.bf16.msra.mxu1 %v1048_v59 }
  0x75   : > { %711 = vmatpush.bf16.msrb.mxu2 %v900_v63 }
  0x76   : > { %724 = vmatpush.bf16.msrb.mxu3 %v1028_v3 }
  0x77   : > { %737 = vmatpush.bf16.msra.mxu0 %v904_v4 }
  0x78   : > { %750 = vmatpush.bf16.msra.mxu1 %v1032_v6 }
  0xb7   : > { %v249_v7 = vpop.f32.mrf.mxu0 }
  0xb8   : > { %v266_v8 = vpack.c.bf16 %v249_v7, %v249_v7  ;;  %v262_v9 = vpop.f32.mrf.mxu1 }
  0xb9   : > { %v267_v10 = vpack.c.bf16 %v262_v9, %v262_v9 }
  0xba   : > { %660 = vmatmul.bf16.vlgmr.msra.gmra.mxu2 %v266_v8  ;;  %686 = vmatmul.bf16.vlgmr.msrb.gmra.mxu0 %v266_v8 }
  0xbb   : > { %673 = vmatmul.bf16.vlgmr.msra.gmra.mxu3 %v267_v10  ;;  %699 = vmatmul.bf16.vlgmr.msrb.gmra.mxu1 %v267_v10 }
  0xbf   : > { %v251_v11 = vpop.f32.mrf.mxu0 }
  0xc0   : > { %v264_v12 = vpop.f32.mrf.mxu1 }
  0xca   : > { %712 = vmatmul.bf16.vlgmr.msrb.gmra.mxu2 %v266_v8  ;;  %738 = vmatmul.bf16.vlgmr.msra.gmra.mxu0 %v266_v8 }
  0xcb   : > { %725 = vmatmul.bf16.vlgmr.msrb.gmra.mxu3 %v267_v10  ;;  %751 = vmatmul.bf16.vlgmr.msra.gmra.mxu1 %v267_v10 }
 0x137   : > { %v687_v13 = vpop.f32.mrf.mxu0 }
 0x138   : > { %v700_v14 = vpop.f32.mrf.mxu1 }
 0x139   : > { %v701_v15 = vadd.f32 %v700_v14, %v687_v13 }
 0x13b   : > { %757 = vst [vmem:[%s219_s6 + $0x8] sm:$0xff] %v701_v15 }
 0x13d   : > { %v661_v16 = vpop.f32.mrf.mxu2 }
 0x13e   : > { %v674_v17 = vpop.f32.mrf.mxu3 }
 0x13f   : > { %v675_v18 = vadd.f32 %v674_v17, %v661_v16  ;;  %v689_v19 = vpop.f32.mrf.mxu0 }
 0x140   : > { %v702_v20 = vpop.f32.mrf.mxu1 }
 0x141   : > { %756 = vst [vmem:[%s219_s6] sm:$0xff] %v675_v18 }
 0x145   : > { %v663_v21 = vpop.f32.mrf.mxu2 }
 0x146   : > { %v676_v22 = vpop.f32.mrf.mxu3 }
 0x147   : > { %v739_v23 = vpop.f32.mrf.mxu0 }
 0x148   : > { %v752_v24 = vpop.f32.mrf.mxu1 }
 0x149   : > { %v753_v25 = vadd.f32 %v752_v24, %v739_v23 }
 0x14b   : > { %759 = vst [vmem:[%s219_s6 + $0x18] sm:$0xff] %v753_v25 }
 0x14d   : > { %v713_v26 = vpop.f32.mrf.mxu2 }
 0x14e   : > { %v726_v27 = vpop.f32.mrf.mxu3 }
 0x14f   : > { %v727_v28 = vadd.f32 %v726_v27, %v713_v26  ;;  %v741_v29 = vpop.f32.mrf.mxu0 }
 0x150   : > { %v754_v30 = vpop.f32.mrf.mxu1 }
 0x151   : > { %758 = vst [vmem:[%s219_s6 + $0x10] sm:$0xff] %v727_v28 }
 0x152   : > { %1407 = shalt.err (!%p1404_p8)
}
 0x153   : > { %1228 = dma.vmem_to_hbm [thread:$0]  (%p1535_p11), %s775_s17, 512, %s777_s20, %s761_s16  }
 0x155   : > { %v715_v31 = vpop.f32.mrf.mxu2 }
 0x156   : > { %v728_v32 = vpop.f32.mrf.mxu3 }
 0x157 PF: > { %s788_s30 = sand.u32 1, %s1442_s12   ;;  %p1776_p9 = scmp.ge.s32.totalorder %s1454_s15, 2 }
 0x158   : > { %s789_s4 = scalar_lea.sflag [#allocation4], %s788_s30 }
 0x159   : > { %p1242_p10 = pnand %p1776_p9, %p1539_p12 }
 0x15b   : > { %p1243_p1 = pneg %p1242_p10 }
 0x15d   : > { %1437 = dma.done.wait (%p1243_p1), %s789_s4, 512  }
 0x15e   : > { %1439 = vsyncadd (%p1243_p1), %s789_s4, 4294966784  ;;  %p15_p11 = scmp.ge.s32.totalorder %s1508_s18, 4   ;;  %s1777_s12 = smov %s1446_s13 }
 0x15f   : > { %s1778_s13 = smov %s1450_s14  ;;  %s1779_s14 = smov %s1520_s21 }
 0x160   : > { %s1780_s15 = smov %s1508_s18  ;;  %17 = sbr.rel (!%p15_p11) target bundleno = 5 (0x5), region = 84 }
 0x165   :  { %795 = vsyncpa [#allocation3], 1 }
 0x166   :  { %797 = vsyncpa [#allocation3 + $0x1], 1 }
 0x167   :  { %798 = vsyncpa [#allocation6], 1 }
 0x168   :  { %799 = vsyncpa [#allocation4], 1 }
 0x169   :  { %801 = vsyncpa [#allocation4 + $0x1], 1 }

</bundles_post_ra>
